<compile_context>
chip_gen: v6e
topology: v6e:2x2x1
jax: 0.10.0
libtpu: 0.0.40
codegen_flags: <defaults>
</compile_context>

<pallas_src>
import jax
import jax.numpy as jnp
from jax.experimental import pallas as pl
from jax.experimental.pallas import tpu as pltpu

NEG = -1e30  # "-inf" stand-in for max-pool padding (never survives a max)


# ----------------------------------------------------------------------------
# Host-side (one-time) weight preparation: banded conv weights for the
# W-major layout, tiled BN scale/bias, stride-2 selection matrix.
# ----------------------------------------------------------------------------
def _build_band_conv1(w, Ho):
    """w: (kh, kw, Cin, Cout) -> (kw, Hin*Cin, Ho*Cout) banded weight.

    out[j, hin*Cin+ci, ho*Cout+co] = w[hin-ho, j, ci, co] for 0 <= hin-ho < kh.
    """
    kh, kw, cin, cout = w.shape
    hin_n = Ho + kh - 1
    t = jnp.zeros((kw, hin_n, cin, Ho, cout), w.dtype)
    for i in range(kh):
        for ho in range(Ho):
            t = t.at[:, ho + i, :, ho, :].set(w[i])
    return t.reshape(kw, hin_n * cin, Ho * cout)


def _build_band_conv2(w, Hp, nH):
    """w: (3, 3, Cin, Cout) -> (3, nH*Cin, Hp*Cout).

    Consumes the pool-1 result in its 'oversampled H window' column layout
    (nH = 2*Hp-1 window-start blocks of Cin); folds both the stride-2 H
    selection and conv2's zero H-padding into the band.
    """
    kh, kw, cin, cout = w.shape
    t = jnp.zeros((kw, nH, cin, Hp, cout), w.dtype)
    for i in range(kh):
        for ho in range(Hp):
            hp = ho - 1 + i            # conv2 has padding = 1
            if 0 <= hp < Hp:
                t = t.at[:, 2 * hp, :, ho, :].set(w[i])
    return t.reshape(kw, nH * cin, Hp * cout)


def prepare_pallas_params(layers, cls_w, cls_b, in_hw):
    """Pre-compute kernel-ready parameters and the static dims of the net."""
    H0, W0 = int(in_hw[0]), int(in_hw[1])
    conv_layers = [l for l in layers if l['kind'] == 'conv']
    assert len(conv_layers) == 2, "fused kernel is specialised to cfg=[C1,'M',C2]"
    w1, w2 = conv_layers[0]['w'], conv_layers[1]['w']
    kh1 = w1.shape[0]
    C0, C1 = w1.shape[2], w1.shape[3]
    C2 = w2.shape[3]

    # conv1: kh1 x kh1, valid
    H1, W1 = H0 - kh1 + 1, W0 - kh1 + 1
    # 3x3 / stride-2 / ceil_mode max pool
    Hp = -(-(H1 - 3) // 2) + 1
    Wp = -(-(W1 - 3) // 2) + 1
    ph = max(0, 2 * (Hp - 1) + 3 - H1)
    pw = max(0, 2 * (Wp - 1) + 3 - W1)
    nH, nW = 2 * Hp - 1, 2 * Wp - 1
    # conv2: 3x3, pad 1 -> same spatial size; loc pool (5,2)/(1,1)/(0,1)
    H2, W2 = Hp, Wp
    assert H2 == 5, "loc MaxPool2d((5,2)) expects feature height 5"
    Wl = W2 + 1
    NC = cls_w.shape[1]

    dims = dict(H0=H0, W0=W0, C0=C0, C1=C1, C2=C2, NC=NC, K1=kh1,
                H1=H1, W1=W1, Hp=Hp, Wp=Wp, ph=ph, pw=pw, nH=nH, nW=nW,
                H2=H2, W2=W2, Wl=Wl)

    sel = jnp.zeros((Wp, nW), jnp.float32)
    sel = sel.at[jnp.arange(Wp), 2 * jnp.arange(Wp)].set(1.0)

    prep = dict(
        w1t=_build_band_conv1(w1, H1),                                 # (K1, H0*C0, H1*C1)
        s1=jnp.tile(conv_layers[0]['scale'][0], H1)[None, :],          # (1, H1*C1)
        b1=jnp.tile(conv_layers[0]['bias'][0], H1)[None, :],
        w2t=_build_band_conv2(w2, Hp, nH),                             # (3, nH*C1, H2*C2)
        s2=jnp.tile(conv_layers[1]['scale'][0], H2)[None, :],          # (1, H2*C2)
        b2=jnp.tile(conv_layers[1]['bias'][0], H2)[None, :],
        sel=sel,                                                       # (Wp, nW)
        cw=cls_w,                                                      # (C2, NC)
        cb=cls_b,                                                      # (1, NC)
    )
    return prep, dims


# ----------------------------------------------------------------------------
# The single fused Pallas kernel (one grid step = one batch sample).
# Activation layout: rows = width, cols = h*C + c  ("W-major").
# ----------------------------------------------------------------------------
def _make_kernel(d):
    C1, C2 = d['C1'], d['C2']
    H1, W1, K1 = d['H1'], d['W1'], d['K1']
    Hp, Wp, ph, pw, nH, nW = d['Hp'], d['Wp'], d['ph'], d['pw'], d['nH'], d['nW']
    H2, W2, Wl = d['H2'], d['W2'], d['Wl']

    def kernel(x_ref, w1t_ref, s1_ref, b1_ref, w2t_ref, s2_ref, b2_ref,
               sel_ref, cw_ref, cb_ref, o_ref,
               a1_ref, cm_ref, m3_ref, p1_ref, a2_ref, hm_ref, lp_ref):
        # ---- conv1 (5x5 valid) + BN + ReLU: K1 banded MXU matmuls ----------
        acc1 = jnp.zeros((W1, H1 * C1), jnp.float32)
        for j in range(K1):
            acc1 = acc1 + jnp.dot(x_ref[0, j:j + W1, :], w1t_ref[j],
                                  preferred_element_type=jnp.float32)
        a1_ref[0:W1, 0:H1 * C1] = jnp.maximum(
            acc1 * s1_ref[...] + b1_ref[...], 0.0)
        if ph:                        # ceil-mode padding along H (extra blocks)
            a1_ref[0:W1, H1 * C1:] = jnp.full((W1, ph * C1), NEG, jnp.float32)
        if pw:                        # ceil-mode padding along W (extra rows)
            a1_ref[W1:, :] = jnp.full((pw, (H1 + ph) * C1), NEG, jnp.float32)

        # ---- maxpool 3x3 / stride 2 / ceil_mode=True ------------------------
        # window max along H (shifted channel-block slices)
        cm_ref[...] = jnp.maximum(
            jnp.maximum(a1_ref[:, 0:nH * C1], a1_ref[:, C1:(nH + 1) * C1]),
            a1_ref[:, 2 * C1:(nH + 2) * C1])
        # window max along W (shifted row slices)
        m3_ref[...] = jnp.maximum(
            jnp.maximum(cm_ref[0:nW, :], cm_ref[1:nW + 1, :]),
            cm_ref[2:nW + 2, :])
        # stride-2 W selection as an exact 0/1 matmul; the stride-2 H selection
        # is folded into w2t.  Rows 0 and Wp+1 are conv2's zero W-padding.
        p1_ref[0:1, :] = jnp.zeros((1, nH * C1), jnp.float32)
        p1_ref[1:Wp + 1, :] = jnp.dot(sel_ref[...], m3_ref[...],
                                      preferred_element_type=jnp.float32)
        p1_ref[Wp + 1:, :] = jnp.zeros((1, nH * C1), jnp.float32)

        # ---- conv2 (3x3, pad 1) + BN + ReLU: 3 banded MXU matmuls ----------
        acc2 = jnp.zeros((W2, H2 * C2), jnp.float32)
        for j in range(3):
            acc2 = acc2 + jnp.dot(p1_ref[j:j + W2, :], w2t_ref[j],
                                  preferred_element_type=jnp.float32)
        a2_ref[...] = jnp.maximum(acc2 * s2_ref[...] + b2_ref[...], 0.0)

        # ---- loc maxpool (5,2) / stride (1,1) / padding (0,1) --------------
        hm = a2_ref[:, 0:C2]
        for h in range(1, H2):        # max over the H2 channel blocks
            hm = jnp.maximum(hm, a2_ref[:, h * C2:(h + 1) * C2])
        hm_ref[...] = hm                                  # (W2, C2)
        lp_ref[0:1, :] = hm_ref[0:1, :]
        lp_ref[1:W2, :] = jnp.maximum(hm_ref[0:W2 - 1, :], hm_ref[1:W2, :])
        lp_ref[W2:, :] = hm_ref[W2 - 1:W2, :]             # (Wl, C2)

        # ---- 1x1 cls conv + log_softmax over classes (lane axis) ------------
        logits = jnp.dot(lp_ref[...], cw_ref[...],
                         preferred_element_type=jnp.float32) + cb_ref[...]
        m = jnp.max(logits, axis=-1, keepdims=True)
        lse = m + jnp.log(jnp.sum(jnp.exp(logits - m), axis=-1, keepdims=True))
        o_ref[0] = logits - lse

    return kernel


def mynet_forward_pallas(x_nchw, prep, d):
    B = x_nchw.shape[0]
    # NCHW -> W-major 2-D layout: (B, W, H*Cin)
    x2 = jnp.transpose(x_nchw, (0, 3, 2, 1)).reshape(B, d['W0'], d['H0'] * d['C0'])

    def full3(a):
        return pl.BlockSpec(a.shape, lambda b: (0, 0, 0))

    def full2(a):
        return pl.BlockSpec(a.shape, lambda b: (0, 0))

    grid_spec = pltpu.PrefetchScalarGridSpec(
        num_scalar_prefetch=0,
        grid=(B,),
        in_specs=[
            pl.BlockSpec((1, d['W0'], d['H0'] * d['C0']), lambda b: (b, 0, 0)),
            full3(prep['w1t']), full2(prep['s1']), full2(prep['b1']),
            full3(prep['w2t']), full2(prep['s2']), full2(prep['b2']),
            full2(prep['sel']), full2(prep['cw']), full2(prep['cb']),
        ],
        out_specs=pl.BlockSpec((1, d['Wl'], d['NC']), lambda b: (b, 0, 0)),
        scratch_shapes=[
            pltpu.VMEM((d['W1'] + d['pw'], (d['H1'] + d['ph']) * d['C1']), jnp.float32),
            pltpu.VMEM((d['W1'] + d['pw'], d['nH'] * d['C1']), jnp.float32),
            pltpu.VMEM((d['nW'], d['nH'] * d['C1']), jnp.float32),
            pltpu.VMEM((d['Wp'] + 2, d['nH'] * d['C1']), jnp.float32),
            pltpu.VMEM((d['W2'], d['H2'] * d['C2']), jnp.float32),
            pltpu.VMEM((d['W2'], d['C2']), jnp.float32),
            pltpu.VMEM((d['Wl'], d['C2']), jnp.float32),
        ],
    )
    out = pl.pallas_call(
        _make_kernel(d),
        out_shape=jax.ShapeDtypeStruct((B, d['Wl'], d['NC']), jnp.float32),
        grid_spec=grid_spec,
        compiler_params=pltpu.CompilerParams(
            dimension_semantics=("parallel",)),
    )(x2, prep['w1t'], prep['s1'], prep['b1'],
      prep['w2t'], prep['s2'], prep['b2'],
      prep['sel'], prep['cw'], prep['cb'])
    return jnp.transpose(out, (1, 0, 2))      # (W, B, num_classes)


# ----------------------------------------------------------------------------
# Parameter construction (deterministic, BN folded into scale/bias)
# ----------------------------------------------------------------------------
def init_params(key, cfg, num_classes):
    eps = 1e-5
    keys = iter(jax.random.split(key, 64))
    layers = []
    in_ch = 3
    for i, l in enumerate(cfg):
        if i != 0 and l == 'M':
            layers.append({'kind': 'pool'})
            continue
        out_ch = int(l)
        ksize = 5 if i == 0 else 3
        pad = 0 if i == 0 else 1
        w = 0.1 * jax.random.normal(next(keys), (ksize, ksize, in_ch, out_ch), jnp.float32)
        conv_b = 0.1 * jax.random.normal(next(keys), (out_ch,), jnp.float32)
        gamma = 1.0 + 0.1 * jax.random.normal(next(keys), (out_ch,), jnp.float32)
        beta = 0.1 * jax.random.normal(next(keys), (out_ch,), jnp.float32)
        mean = 0.1 * jax.random.normal(next(keys), (out_ch,), jnp.float32)
        var = 1.0 + 0.1 * jnp.abs(jax.random.normal(next(keys), (out_ch,), jnp.float32))
        scale = gamma / jnp.sqrt(var + eps)
        bias = (conv_b - mean) * scale + beta
        layers.append({'kind': 'conv', 'w': w, 'scale': scale[None, :],
                       'bias': bias[None, :], 'pad': pad})
        in_ch = out_ch
    cls_w = 0.1 * jax.random.normal(next(keys), (in_ch, num_classes), jnp.float32)
    cls_b = 0.1 * jax.random.normal(next(keys), (1, num_classes), jnp.float32)
    return layers, cls_w, cls_b


# ----------------------------------------------------------------------------
# Pure-JAX reference (for validation only)
# ----------------------------------------------------------------------------
def reference_forward(x_nchw, layers, cls_w, cls_b):
    x = jnp.transpose(x_nchw, (0, 2, 3, 1))
    dn = ('NHWC', 'HWIO', 'NHWC')
    for lyr in layers:
        if lyr['kind'] == 'conv':
            p = lyr['pad']
            y = jax.lax.conv_general_dilated(
                x, lyr['w'], (1, 1), [(p, p), (p, p)], dimension_numbers=dn)
            x = jnp.maximum(y * lyr['scale'][0] + lyr['bias'][0], 0.0)
        else:
            b, h, w, c = x.shape
            ho = -(-(h - 3) // 2) + 1
            wo = -(-(w - 3) // 2) + 1
            ph = max(0, 2 * ho + 1 - h)
            pw = max(0, 2 * wo + 1 - w)
            x = jax.lax.reduce_window(
                x, -jnp.inf, jax.lax.max, (1, 3, 3, 1), (1, 2, 2, 1),
                ((0, 0), (0, ph), (0, pw), (0, 0)))
    x = jax.lax.reduce_window(
        x, -jnp.inf, jax.lax.max, (1, 5, 2, 1), (1, 1, 1, 1),
        ((0, 0), (0, 0), (1, 1), (0, 0)))
    logits = jnp.einsum('bhwc,cn->bhwn', x, cls_w) + cls_b[0]
    logits = jnp.transpose(logits[:, 0], (1, 0, 2))  # (W, B, num_classes)
    return jax.nn.log_softmax(logits, axis=-1)


# ----------------------------------------------------------------------------
if __name__ == "__main__":
    model_cfg = [8, 'M', 16]
    num_classes = 10

    key = jax.random.PRNGKey(0)
    k_params, k_x = jax.random.split(key)
    layers, cls_w, cls_b = init_params(k_params, model_cfg, num_classes)

    # NCHW input, matching the PyTorch module's convention.
    x = jax.random.normal(k_x, (2, 3, 15, 24), jnp.float32)

    prep, dims = prepare_pallas_params(layers, cls_w, cls_b, x.shape[2:])

    fwd = jax.jit(lambda xx: mynet_forward_pallas(xx, prep, dims))
    out = jax.block_until_ready(fwd(x))

    ref = jax.block_until_ready(reference_forward(x, layers, cls_w, cls_b))

    assert out.shape == (11, 2, num_classes), out.shape
    err = float(jnp.max(jnp.abs(out - ref)))
    assert err < 1e-2, err
    # log_softmax sanity: per-row probabilities sum to 1
    assert jnp.allclose(jnp.sum(jnp.exp(out), axis=-1), 1.0, atol=1e-3)

    print("KERNEL_OK")
</pallas_src>

<mosaic_0001>
module attributes {stable_mosaic.version = 11 : i64} {
  func.func @kernel(%arg0: i32, %arg1: memref<1x24x45xf32, #tpu.memory_space<vmem>>, %arg2: memref<5x45x88xf32, #tpu.memory_space<vmem>>, %arg3: memref<1x88xf32, #tpu.memory_space<vmem>>, %arg4: memref<1x88xf32, #tpu.memory_space<vmem>>, %arg5: memref<3x72x80xf32, #tpu.memory_space<vmem>>, %arg6: memref<1x80xf32, #tpu.memory_space<vmem>>, %arg7: memref<1x80xf32, #tpu.memory_space<vmem>>, %arg8: memref<10x19xf32, #tpu.memory_space<vmem>>, %arg9: memref<16x10xf32, #tpu.memory_space<vmem>>, %arg10: memref<1x10xf32, #tpu.memory_space<vmem>>, %arg11: memref<1x11x10xf32, #tpu.memory_space<vmem>>, %arg12: memref<21x88xf32, #tpu.memory_space<vmem>>, %arg13: memref<21x72xf32, #tpu.memory_space<vmem>>, %arg14: memref<19x72xf32, #tpu.memory_space<vmem>>, %arg15: memref<12x72xf32, #tpu.memory_space<vmem>>, %arg16: memref<10x80xf32, #tpu.memory_space<vmem>>, %arg17: memref<10x16xf32, #tpu.memory_space<vmem>>, %arg18: memref<11x16xf32, #tpu.memory_space<vmem>>) attributes {dimension_semantics = [#tpu.dimension_semantics<parallel>], iteration_bounds = array<i64: 2>, scalar_prefetch = 0 : i64, scratch_operands = 7 : i64, tpu.core_type = #tpu.core_type<tc>, window_params = [{transform_indices = @transform_0, window_bounds = array<i64: 1, 24, 45>}, {pipeline_mode = #tpu.pipeline_mode<synchronous>, transform_indices = @transform_1, window_bounds = array<i64: 5, 45, 88>}, {pipeline_mode = #tpu.pipeline_mode<synchronous>, transform_indices = @transform_2, window_bounds = array<i64: 1, 88>}, {pipeline_mode = #tpu.pipeline_mode<synchronous>, transform_indices = @transform_3, window_bounds = array<i64: 1, 88>}, {pipeline_mode = #tpu.pipeline_mode<synchronous>, transform_indices = @transform_4, window_bounds = array<i64: 3, 72, 80>}, {pipeline_mode = #tpu.pipeline_mode<synchronous>, transform_indices = @transform_5, window_bounds = array<i64: 1, 80>}, {pipeline_mode = #tpu.pipeline_mode<synchronous>, transform_indices = @transform_6, window_bounds = array<i64: 1, 80>}, {pipeline_mode = #tpu.pipeline_mode<synchronous>, transform_indices = @transform_7, window_bounds = array<i64: 10, 19>}, {pipeline_mode = #tpu.pipeline_mode<synchronous>, transform_indices = @transform_8, window_bounds = array<i64: 16, 10>}, {pipeline_mode = #tpu.pipeline_mode<synchronous>, transform_indices = @transform_9, window_bounds = array<i64: 1, 10>}, {transform_indices = @transform_10, window_bounds = array<i64: 1, 11, 10>}]} {
    %cst = arith.constant 0.000000e+00 : f32
    %0 = vector.broadcast %cst : f32 to vector<20x88xf32>
    %c0 = arith.constant 0 : index
    %c0_0 = arith.constant 0 : index
    %c0_1 = arith.constant 0 : index
    %1 = vector.load %arg1[%c0, %c0_0, %c0_1] : memref<1x24x45xf32, #tpu.memory_space<vmem>>, vector<1x20x45xf32>
    %2 = vector.shape_cast %1 : vector<1x20x45xf32> to vector<20x45xf32>
    %c0_2 = arith.constant 0 : index
    %c0_3 = arith.constant 0 : index
    %c0_4 = arith.constant 0 : index
    %3 = vector.load %arg2[%c0_2, %c0_3, %c0_4] : memref<5x45x88xf32, #tpu.memory_space<vmem>>, vector<1x45x88xf32>
    %4 = vector.shape_cast %3 : vector<1x45x88xf32> to vector<45x88xf32>
    %cst_5 = arith.constant dense<0.000000e+00> : vector<20x88xf32>
    %5 = tpu.matmul %2, %4, %cst_5 {dimension_numbers = #tpu.dot_dimension_numbers<[1], [0], [0], [1], [0, 0, 1, 1], [], []>} : vector<20x45xf32>, vector<45x88xf32>, vector<20x88xf32> -> vector<20x88xf32>
    %6 = arith.addf %0, %5 : vector<20x88xf32>
    %c0_6 = arith.constant 0 : index
    %c1 = arith.constant 1 : index
    %c0_7 = arith.constant 0 : index
    %7 = vector.load %arg1[%c0_6, %c1, %c0_7] : memref<1x24x45xf32, #tpu.memory_space<vmem>>, vector<1x20x45xf32>
    %8 = vector.shape_cast %7 : vector<1x20x45xf32> to vector<20x45xf32>
    %c1_8 = arith.constant 1 : index
    %c0_9 = arith.constant 0 : index
    %c0_10 = arith.constant 0 : index
    %9 = vector.load %arg2[%c1_8, %c0_9, %c0_10] : memref<5x45x88xf32, #tpu.memory_space<vmem>>, vector<1x45x88xf32>
    %10 = vector.shape_cast %9 : vector<1x45x88xf32> to vector<45x88xf32>
    %cst_11 = arith.constant dense<0.000000e+00> : vector<20x88xf32>
    %11 = tpu.matmul %8, %10, %cst_11 {dimension_numbers = #tpu.dot_dimension_numbers<[1], [0], [0], [1], [0, 0, 1, 1], [], []>} : vector<20x45xf32>, vector<45x88xf32>, vector<20x88xf32> -> vector<20x88xf32>
    %12 = arith.addf %6, %11 : vector<20x88xf32>
    %c0_12 = arith.constant 0 : index
    %c2 = arith.constant 2 : index
    %c0_13 = arith.constant 0 : index
    %13 = vector.load %arg1[%c0_12, %c2, %c0_13] : memref<1x24x45xf32, #tpu.memory_space<vmem>>, vector<1x20x45xf32>
    %14 = vector.shape_cast %13 : vector<1x20x45xf32> to vector<20x45xf32>
    %c2_14 = arith.constant 2 : index
    %c0_15 = arith.constant 0 : index
    %c0_16 = arith.constant 0 : index
    %15 = vector.load %arg2[%c2_14, %c0_15, %c0_16] : memref<5x45x88xf32, #tpu.memory_space<vmem>>, vector<1x45x88xf32>
    %16 = vector.shape_cast %15 : vector<1x45x88xf32> to vector<45x88xf32>
    %cst_17 = arith.constant dense<0.000000e+00> : vector<20x88xf32>
    %17 = tpu.matmul %14, %16, %cst_17 {dimension_numbers = #tpu.dot_dimension_numbers<[1], [0], [0], [1], [0, 0, 1, 1], [], []>} : vector<20x45xf32>, vector<45x88xf32>, vector<20x88xf32> -> vector<20x88xf32>
    %18 = arith.addf %12, %17 : vector<20x88xf32>
    %c0_18 = arith.constant 0 : index
    %c3 = arith.constant 3 : index
    %c0_19 = arith.constant 0 : index
    %19 = vector.load %arg1[%c0_18, %c3, %c0_19] : memref<1x24x45xf32, #tpu.memory_space<vmem>>, vector<1x20x45xf32>
    %20 = vector.shape_cast %19 : vector<1x20x45xf32> to vector<20x45xf32>
    %c3_20 = arith.constant 3 : index
    %c0_21 = arith.constant 0 : index
    %c0_22 = arith.constant 0 : index
    %21 = vector.load %arg2[%c3_20, %c0_21, %c0_22] : memref<5x45x88xf32, #tpu.memory_space<vmem>>, vector<1x45x88xf32>
    %22 = vector.shape_cast %21 : vector<1x45x88xf32> to vector<45x88xf32>
    %cst_23 = arith.constant dense<0.000000e+00> : vector<20x88xf32>
    %23 = tpu.matmul %20, %22, %cst_23 {dimension_numbers = #tpu.dot_dimension_numbers<[1], [0], [0], [1], [0, 0, 1, 1], [], []>} : vector<20x45xf32>, vector<45x88xf32>, vector<20x88xf32> -> vector<20x88xf32>
    %24 = arith.addf %18, %23 : vector<20x88xf32>
    %c0_24 = arith.constant 0 : index
    %c4 = arith.constant 4 : index
    %c0_25 = arith.constant 0 : index
    %25 = vector.load %arg1[%c0_24, %c4, %c0_25] : memref<1x24x45xf32, #tpu.memory_space<vmem>>, vector<1x20x45xf32>
    %26 = vector.shape_cast %25 : vector<1x20x45xf32> to vector<20x45xf32>
    %c4_26 = arith.constant 4 : index
    %c0_27 = arith.constant 0 : index
    %c0_28 = arith.constant 0 : index
    %27 = vector.load %arg2[%c4_26, %c0_27, %c0_28] : memref<5x45x88xf32, #tpu.memory_space<vmem>>, vector<1x45x88xf32>
    %28 = vector.shape_cast %27 : vector<1x45x88xf32> to vector<45x88xf32>
    %cst_29 = arith.constant dense<0.000000e+00> : vector<20x88xf32>
    %29 = tpu.matmul %26, %28, %cst_29 {dimension_numbers = #tpu.dot_dimension_numbers<[1], [0], [0], [1], [0, 0, 1, 1], [], []>} : vector<20x45xf32>, vector<45x88xf32>, vector<20x88xf32> -> vector<20x88xf32>
    %30 = arith.addf %24, %29 : vector<20x88xf32>
    %c0_30 = arith.constant 0 : index
    %c0_31 = arith.constant 0 : index
    %31 = vector.load %arg3[%c0_30, %c0_31] : memref<1x88xf32, #tpu.memory_space<vmem>>, vector<1x88xf32>
    %32 = vector.broadcast %31 : vector<1x88xf32> to vector<20x88xf32>
    %33 = arith.mulf %30, %32 : vector<20x88xf32>
    %c0_32 = arith.constant 0 : index
    %c0_33 = arith.constant 0 : index
    %34 = vector.load %arg4[%c0_32, %c0_33] : memref<1x88xf32, #tpu.memory_space<vmem>>, vector<1x88xf32>
    %35 = vector.broadcast %34 : vector<1x88xf32> to vector<20x88xf32>
    %36 = arith.addf %33, %35 : vector<20x88xf32>
    %cst_34 = arith.constant 0.000000e+00 : f32
    %37 = vector.broadcast %cst_34 : f32 to vector<20x88xf32>
    %38 = arith.maximumf %36, %37 : vector<20x88xf32>
    %c0_35 = arith.constant 0 : index
    %c0_36 = arith.constant 0 : index
    %39 = vector.load %arg12[%c0_35, %c0_36] : memref<21x88xf32, #tpu.memory_space<vmem>>, vector<20x88xf32>
    tpu.vector_store %arg12[%c0_35, %c0_36], %38 {strides = array<i32>} : memref<21x88xf32, #tpu.memory_space<vmem>>, vector<20x88xf32>,
    %cst_37 = arith.constant -1.000000e+30 : f32
    %40 = vector.broadcast %cst_37 : f32 to vector<1x88xf32>
    %c20 = arith.constant 20 : index
    %c0_38 = arith.constant 0 : index
    %41 = vector.load %arg12[%c20, %c0_38] : memref<21x88xf32, #tpu.memory_space<vmem>>, vector<1x88xf32>
    tpu.vector_store %arg12[%c20, %c0_38], %40 {strides = array<i32>} : memref<21x88xf32, #tpu.memory_space<vmem>>, vector<1x88xf32>,
    %c0_39 = arith.constant 0 : index
    %c0_40 = arith.constant 0 : index
    %42 = vector.load %arg12[%c0_39, %c0_40] : memref<21x88xf32, #tpu.memory_space<vmem>>, vector<21x72xf32>
    %c0_41 = arith.constant 0 : index
    %c8 = arith.constant 8 : index
    %43 = vector.load %arg12[%c0_41, %c8] : memref<21x88xf32, #tpu.memory_space<vmem>>, vector<21x72xf32>
    %44 = arith.maximumf %42, %43 : vector<21x72xf32>
    %c0_42 = arith.constant 0 : index
    %c16 = arith.constant 16 : index
    %45 = vector.load %arg12[%c0_42, %c16] : memref<21x88xf32, #tpu.memory_space<vmem>>, vector<21x72xf32>
    %46 = arith.maximumf %44, %45 : vector<21x72xf32>
    %c0_43 = arith.constant 0 : index
    %c0_44 = arith.constant 0 : index
    %47 = vector.load %arg13[%c0_43, %c0_44] : memref<21x72xf32, #tpu.memory_space<vmem>>, vector<21x72xf32>
    tpu.vector_store %arg13[%c0_43, %c0_44], %46 {strides = array<i32>} : memref<21x72xf32, #tpu.memory_space<vmem>>, vector<21x72xf32>,
    %c0_45 = arith.constant 0 : index
    %c0_46 = arith.constant 0 : index
    %48 = vector.load %arg13[%c0_45, %c0_46] : memref<21x72xf32, #tpu.memory_space<vmem>>, vector<19x72xf32>
    %c1_47 = arith.constant 1 : index
    %c0_48 = arith.constant 0 : index
    %49 = vector.load %arg13[%c1_47, %c0_48] : memref<21x72xf32, #tpu.memory_space<vmem>>, vector<19x72xf32>
    %50 = arith.maximumf %48, %49 : vector<19x72xf32>
    %c2_49 = arith.constant 2 : index
    %c0_50 = arith.constant 0 : index
    %51 = vector.load %arg13[%c2_49, %c0_50] : memref<21x72xf32, #tpu.memory_space<vmem>>, vector<19x72xf32>
    %52 = arith.maximumf %50, %51 : vector<19x72xf32>
    %c0_51 = arith.constant 0 : index
    %c0_52 = arith.constant 0 : index
    %53 = vector.load %arg14[%c0_51, %c0_52] : memref<19x72xf32, #tpu.memory_space<vmem>>, vector<19x72xf32>
    tpu.vector_store %arg14[%c0_51, %c0_52], %52 {strides = array<i32>} : memref<19x72xf32, #tpu.memory_space<vmem>>, vector<19x72xf32>,
    %cst_53 = arith.constant 0.000000e+00 : f32
    %54 = vector.broadcast %cst_53 : f32 to vector<1x72xf32>
    %c0_54 = arith.constant 0 : index
    %c0_55 = arith.constant 0 : index
    %55 = vector.load %arg15[%c0_54, %c0_55] : memref<12x72xf32, #tpu.memory_space<vmem>>, vector<1x72xf32>
    tpu.vector_store %arg15[%c0_54, %c0_55], %54 {strides = array<i32>} : memref<12x72xf32, #tpu.memory_space<vmem>>, vector<1x72xf32>,
    %c0_56 = arith.constant 0 : index
    %c0_57 = arith.constant 0 : index
    %56 = vector.load %arg8[%c0_56, %c0_57] : memref<10x19xf32, #tpu.memory_space<vmem>>, vector<10x19xf32>
    %c0_58 = arith.constant 0 : index
    %c0_59 = arith.constant 0 : index
    %57 = vector.load %arg14[%c0_58, %c0_59] : memref<19x72xf32, #tpu.memory_space<vmem>>, vector<19x72xf32>
    %cst_60 = arith.constant dense<0.000000e+00> : vector<10x72xf32>
    %58 = tpu.matmul %56, %57, %cst_60 {dimension_numbers = #tpu.dot_dimension_numbers<[1], [0], [0], [1], [0, 0, 1, 1], [], []>} : vector<10x19xf32>, vector<19x72xf32>, vector<10x72xf32> -> vector<10x72xf32>
    %c1_61 = arith.constant 1 : index
    %c0_62 = arith.constant 0 : index
    %59 = vector.load %arg15[%c1_61, %c0_62] : memref<12x72xf32, #tpu.memory_space<vmem>>, vector<10x72xf32>
    tpu.vector_store %arg15[%c1_61, %c0_62], %58 {strides = array<i32>} : memref<12x72xf32, #tpu.memory_space<vmem>>, vector<10x72xf32>,
    %cst_63 = arith.constant 0.000000e+00 : f32
    %60 = vector.broadcast %cst_63 : f32 to vector<1x72xf32>
    %c11 = arith.constant 11 : index
    %c0_64 = arith.constant 0 : index
    %61 = vector.load %arg15[%c11, %c0_64] : memref<12x72xf32, #tpu.memory_space<vmem>>, vector<1x72xf32>
    tpu.vector_store %arg15[%c11, %c0_64], %60 {strides = array<i32>} : memref<12x72xf32, #tpu.memory_space<vmem>>, vector<1x72xf32>,
    %cst_65 = arith.constant 0.000000e+00 : f32
    %62 = vector.broadcast %cst_65 : f32 to vector<10x80xf32>
    %c0_66 = arith.constant 0 : index
    %c0_67 = arith.constant 0 : index
    %63 = vector.load %arg15[%c0_66, %c0_67] : memref<12x72xf32, #tpu.memory_space<vmem>>, vector<10x72xf32>
    %c0_68 = arith.constant 0 : index
    %c0_69 = arith.constant 0 : index
    %c0_70 = arith.constant 0 : index
    %64 = vector.load %arg5[%c0_68, %c0_69, %c0_70] : memref<3x72x80xf32, #tpu.memory_space<vmem>>, vector<1x72x80xf32>
    %65 = vector.shape_cast %64 : vector<1x72x80xf32> to vector<72x80xf32>
    %cst_71 = arith.constant dense<0.000000e+00> : vector<10x80xf32>
    %66 = tpu.matmul %63, %65, %cst_71 {dimension_numbers = #tpu.dot_dimension_numbers<[1], [0], [0], [1], [0, 0, 1, 1], [], []>} : vector<10x72xf32>, vector<72x80xf32>, vector<10x80xf32> -> vector<10x80xf32>
    %67 = arith.addf %62, %66 : vector<10x80xf32>
    %c1_72 = arith.constant 1 : index
    %c0_73 = arith.constant 0 : index
    %68 = vector.load %arg15[%c1_72, %c0_73] : memref<12x72xf32, #tpu.memory_space<vmem>>, vector<10x72xf32>
    %c1_74 = arith.constant 1 : index
    %c0_75 = arith.constant 0 : index
    %c0_76 = arith.constant 0 : index
    %69 = vector.load %arg5[%c1_74, %c0_75, %c0_76] : memref<3x72x80xf32, #tpu.memory_space<vmem>>, vector<1x72x80xf32>
    %70 = vector.shape_cast %69 : vector<1x72x80xf32> to vector<72x80xf32>
    %cst_77 = arith.constant dense<0.000000e+00> : vector<10x80xf32>
    %71 = tpu.matmul %68, %70, %cst_77 {dimension_numbers = #tpu.dot_dimension_numbers<[1], [0], [0], [1], [0, 0, 1, 1], [], []>} : vector<10x72xf32>, vector<72x80xf32>, vector<10x80xf32> -> vector<10x80xf32>
    %72 = arith.addf %67, %71 : vector<10x80xf32>
    %c2_78 = arith.constant 2 : index
    %c0_79 = arith.constant 0 : index
    %73 = vector.load %arg15[%c2_78, %c0_79] : memref<12x72xf32, #tpu.memory_space<vmem>>, vector<10x72xf32>
    %c2_80 = arith.constant 2 : index
    %c0_81 = arith.constant 0 : index
    %c0_82 = arith.constant 0 : index
    %74 = vector.load %arg5[%c2_80, %c0_81, %c0_82] : memref<3x72x80xf32, #tpu.memory_space<vmem>>, vector<1x72x80xf32>
    %75 = vector.shape_cast %74 : vector<1x72x80xf32> to vector<72x80xf32>
    %cst_83 = arith.constant dense<0.000000e+00> : vector<10x80xf32>
    %76 = tpu.matmul %73, %75, %cst_83 {dimension_numbers = #tpu.dot_dimension_numbers<[1], [0], [0], [1], [0, 0, 1, 1], [], []>} : vector<10x72xf32>, vector<72x80xf32>, vector<10x80xf32> -> vector<10x80xf32>
    %77 = arith.addf %72, %76 : vector<10x80xf32>
    %c0_84 = arith.constant 0 : index
    %c0_85 = arith.constant 0 : index
    %78 = vector.load %arg6[%c0_84, %c0_85] : memref<1x80xf32, #tpu.memory_space<vmem>>, vector<1x80xf32>
    %79 = vector.broadcast %78 : vector<1x80xf32> to vector<10x80xf32>
    %80 = arith.mulf %77, %79 : vector<10x80xf32>
    %c0_86 = arith.constant 0 : index
    %c0_87 = arith.constant 0 : index
    %81 = vector.load %arg7[%c0_86, %c0_87] : memref<1x80xf32, #tpu.memory_space<vmem>>, vector<1x80xf32>
    %82 = vector.broadcast %81 : vector<1x80xf32> to vector<10x80xf32>
    %83 = arith.addf %80, %82 : vector<10x80xf32>
    %cst_88 = arith.constant 0.000000e+00 : f32
    %84 = vector.broadcast %cst_88 : f32 to vector<10x80xf32>
    %85 = arith.maximumf %83, %84 : vector<10x80xf32>
    %c0_89 = arith.constant 0 : index
    %c0_90 = arith.constant 0 : index
    %86 = vector.load %arg16[%c0_89, %c0_90] : memref<10x80xf32, #tpu.memory_space<vmem>>, vector<10x80xf32>
    tpu.vector_store %arg16[%c0_89, %c0_90], %85 {strides = array<i32>} : memref<10x80xf32, #tpu.memory_space<vmem>>, vector<10x80xf32>,
    %c0_91 = arith.constant 0 : index
    %c0_92 = arith.constant 0 : index
    %87 = vector.load %arg16[%c0_91, %c0_92] : memref<10x80xf32, #tpu.memory_space<vmem>>, vector<10x16xf32>
    %c0_93 = arith.constant 0 : index
    %c16_94 = arith.constant 16 : index
    %88 = vector.load %arg16[%c0_93, %c16_94] : memref<10x80xf32, #tpu.memory_space<vmem>>, vector<10x16xf32>
    %89 = arith.maximumf %87, %88 : vector<10x16xf32>
    %c0_95 = arith.constant 0 : index
    %c32 = arith.constant 32 : index
    %90 = vector.load %arg16[%c0_95, %c32] : memref<10x80xf32, #tpu.memory_space<vmem>>, vector<10x16xf32>
    %91 = arith.maximumf %89, %90 : vector<10x16xf32>
    %c0_96 = arith.constant 0 : index
    %c48 = arith.constant 48 : index
    %92 = vector.load %arg16[%c0_96, %c48] : memref<10x80xf32, #tpu.memory_space<vmem>>, vector<10x16xf32>
    %93 = arith.maximumf %91, %92 : vector<10x16xf32>
    %c0_97 = arith.constant 0 : index
    %c64 = arith.constant 64 : index
    %94 = vector.load %arg16[%c0_97, %c64] : memref<10x80xf32, #tpu.memory_space<vmem>>, vector<10x16xf32>
    %95 = arith.maximumf %93, %94 : vector<10x16xf32>
    %c0_98 = arith.constant 0 : index
    %c0_99 = arith.constant 0 : index
    %96 = vector.load %arg17[%c0_98, %c0_99] : memref<10x16xf32, #tpu.memory_space<vmem>>, vector<10x16xf32>
    tpu.vector_store %arg17[%c0_98, %c0_99], %95 {strides = array<i32>} : memref<10x16xf32, #tpu.memory_space<vmem>>, vector<10x16xf32>,
    %c0_100 = arith.constant 0 : index
    %c0_101 = arith.constant 0 : index
    %97 = vector.load %arg17[%c0_100, %c0_101] : memref<10x16xf32, #tpu.memory_space<vmem>>, vector<1x16xf32>
    %c0_102 = arith.constant 0 : index
    %c0_103 = arith.constant 0 : index
    %98 = vector.load %arg18[%c0_102, %c0_103] : memref<11x16xf32, #tpu.memory_space<vmem>>, vector<1x16xf32>
    tpu.vector_store %arg18[%c0_102, %c0_103], %97 {strides = array<i32>} : memref<11x16xf32, #tpu.memory_space<vmem>>, vector<1x16xf32>,
    %c0_104 = arith.constant 0 : index
    %c0_105 = arith.constant 0 : index
    %99 = vector.load %arg17[%c0_104, %c0_105] : memref<10x16xf32, #tpu.memory_space<vmem>>, vector<9x16xf32>
    %c1_106 = arith.constant 1 : index
    %c0_107 = arith.constant 0 : index
    %100 = vector.load %arg17[%c1_106, %c0_107] : memref<10x16xf32, #tpu.memory_space<vmem>>, vector<9x16xf32>
    %101 = arith.maximumf %99, %100 : vector<9x16xf32>
    %c1_108 = arith.constant 1 : index
    %c0_109 = arith.constant 0 : index
    %102 = vector.load %arg18[%c1_108, %c0_109] : memref<11x16xf32, #tpu.memory_space<vmem>>, vector<9x16xf32>
    tpu.vector_store %arg18[%c1_108, %c0_109], %101 {strides = array<i32>} : memref<11x16xf32, #tpu.memory_space<vmem>>, vector<9x16xf32>,
    %c9 = arith.constant 9 : index
    %c0_110 = arith.constant 0 : index
    %103 = vector.load %arg17[%c9, %c0_110] : memref<10x16xf32, #tpu.memory_space<vmem>>, vector<1x16xf32>
    %c10 = arith.constant 10 : index
    %c0_111 = arith.constant 0 : index
    %104 = vector.load %arg18[%c10, %c0_111] : memref<11x16xf32, #tpu.memory_space<vmem>>, vector<1x16xf32>
    tpu.vector_store %arg18[%c10, %c0_111], %103 {strides = array<i32>} : memref<11x16xf32, #tpu.memory_space<vmem>>, vector<1x16xf32>,
    %c0_112 = arith.constant 0 : index
    %c0_113 = arith.constant 0 : index
    %105 = vector.load %arg18[%c0_112, %c0_113] : memref<11x16xf32, #tpu.memory_space<vmem>>, vector<11x16xf32>
    %c0_114 = arith.constant 0 : index
    %c0_115 = arith.constant 0 : index
    %106 = vector.load %arg9[%c0_114, %c0_115] : memref<16x10xf32, #tpu.memory_space<vmem>>, vector<16x10xf32>
    %cst_116 = arith.constant dense<0.000000e+00> : vector<11x10xf32>
    %107 = tpu.matmul %105, %106, %cst_116 {dimension_numbers = #tpu.dot_dimension_numbers<[1], [0], [0], [1], [0, 0, 1, 1], [], []>} : vector<11x16xf32>, vector<16x10xf32>, vector<11x10xf32> -> vector<11x10xf32>
    %c0_117 = arith.constant 0 : index
    %c0_118 = arith.constant 0 : index
    %108 = vector.load %arg10[%c0_117, %c0_118] : memref<1x10xf32, #tpu.memory_space<vmem>>, vector<1x10xf32>
    %109 = vector.broadcast %108 : vector<1x10xf32> to vector<11x10xf32>
    %110 = arith.addf %107, %109 : vector<11x10xf32>
    %cst_119 = arith.constant dense<0xFF800000> : vector<11xf32>
    %111 = vector.multi_reduction <maximumf>, %110, %cst_119 [1] : vector<11x10xf32> to vector<11xf32>
    %112 = vector.shape_cast %111 : vector<11xf32> to vector<11x1xf32>
    %113 = vector.broadcast %112 : vector<11x1xf32> to vector<11x10xf32>
    %114 = arith.subf %110, %113 : vector<11x10xf32>
    %115 = math.exp %114 : vector<11x10xf32>
    %cst_120 = arith.constant dense<0.000000e+00> : vector<11xf32>
    %116 = vector.multi_reduction <add>, %115, %cst_120 [1] : vector<11x10xf32> to vector<11xf32>
    %117 = vector.shape_cast %116 : vector<11xf32> to vector<11x1xf32>
    %118 = math.log %117 : vector<11x1xf32>
    %119 = arith.addf %112, %118 : vector<11x1xf32>
    %120 = vector.broadcast %119 : vector<11x1xf32> to vector<11x10xf32>
    %121 = arith.subf %110, %120 : vector<11x10xf32>
    %c0_121 = arith.constant 0 : index
    %c0_122 = arith.constant 0 : index
    %c0_123 = arith.constant 0 : index
    %122 = vector.load %arg11[%c0_121, %c0_122, %c0_123] : memref<1x11x10xf32, #tpu.memory_space<vmem>>, vector<1x11x10xf32>
    %123 = vector.shape_cast %122 : vector<1x11x10xf32> to vector<11x10xf32>
    %124 = vector.shape_cast %121 : vector<11x10xf32> to vector<1x11x10xf32>
    tpu.vector_store %arg11[%c0_121, %c0_122, %c0_123], %124 {strides = array<i32>} : memref<1x11x10xf32, #tpu.memory_space<vmem>>, vector<1x11x10xf32>,
    return
  }
  func.func @transform_0(%arg0: i32) -> (i32, i32, i32) {
    %c0_i32 = arith.constant 0 : i32
    %c0_i32_0 = arith.constant 0 : i32
    %c0_i32_1 = arith.constant 0 : i32
    return %arg0, %c0_i32, %c0_i32_0 : i32, i32, i32
  }
  func.func @transform_1(%arg0: i32) -> (i32, i32, i32) {
    %c0_i32 = arith.constant 0 : i32
    %c0_i32_0 = arith.constant 0 : i32
    %c0_i32_1 = arith.constant 0 : i32
    %c0_i32_2 = arith.constant 0 : i32
    return %c0_i32, %c0_i32_0, %c0_i32_1 : i32, i32, i32
  }
  func.func @transform_2(%arg0: i32) -> (i32, i32) {
    %c0_i32 = arith.constant 0 : i32
    %c0_i32_0 = arith.constant 0 : i32
    %c0_i32_1 = arith.constant 0 : i32
    return %c0_i32, %c0_i32_0 : i32, i32
  }
  func.func @transform_3(%arg0: i32) -> (i32, i32) {
    %c0_i32 = arith.constant 0 : i32
    %c0_i32_0 = arith.constant 0 : i32
    %c0_i32_1 = arith.constant 0 : i32
    return %c0_i32, %c0_i32_0 : i32, i32
  }
  func.func @transform_4(%arg0: i32) -> (i32, i32, i32) {
    %c0_i32 = arith.constant 0 : i32
    %c0_i32_0 = arith.constant 0 : i32
    %c0_i32_1 = arith.constant 0 : i32
    %c0_i32_2 = arith.constant 0 : i32
    return %c0_i32, %c0_i32_0, %c0_i32_1 : i32, i32, i32
  }
  func.func @transform_5(%arg0: i32) -> (i32, i32) {
    %c0_i32 = arith.constant 0 : i32
    %c0_i32_0 = arith.constant 0 : i32
    %c0_i32_1 = arith.constant 0 : i32
    return %c0_i32, %c0_i32_0 : i32, i32
  }
  func.func @transform_6(%arg0: i32) -> (i32, i32) {
    %c0_i32 = arith.constant 0 : i32
    %c0_i32_0 = arith.constant 0 : i32
    %c0_i32_1 = arith.constant 0 : i32
    return %c0_i32, %c0_i32_0 : i32, i32
  }
  func.func @transform_7(%arg0: i32) -> (i32, i32) {
    %c0_i32 = arith.constant 0 : i32
    %c0_i32_0 = arith.constant 0 : i32
    %c0_i32_1 = arith.constant 0 : i32
    return %c0_i32, %c0_i32_0 : i32, i32
  }
  func.func @transform_8(%arg0: i32) -> (i32, i32) {
    %c0_i32 = arith.constant 0 : i32
    %c0_i32_0 = arith.constant 0 : i32
    %c0_i32_1 = arith.constant 0 : i32
    return %c0_i32, %c0_i32_0 : i32, i32
  }
  func.func @transform_9(%arg0: i32) -> (i32, i32) {
    %c0_i32 = arith.constant 0 : i32
    %c0_i32_0 = arith.constant 0 : i32
    %c0_i32_1 = arith.constant 0 : i32
    return %c0_i32, %c0_i32_0 : i32, i32
  }
  func.func @transform_10(%arg0: i32) -> (i32, i32, i32) {
    %c0_i32 = arith.constant 0 : i32
    %c0_i32_0 = arith.constant 0 : i32
    %c0_i32_1 = arith.constant 0 : i32
    return %arg0, %c0_i32, %c0_i32_0 : i32, i32, i32
  }
}

</mosaic_0001>

<bundles_post_ra>
// kernel: _lambda_.1
= control target key start
LH: loop header
LB: loop body
LE: loop exit
PB: predicated region body
PF: predicated region fallthrough
CT: control target
= control target key end

     0   :  { %15 = vsyncpa [#allocation10], 0  ;;  %s2108_s13 = smov 0   ;;  %s2395_s0 = inlined_call_operand.vmem [shape: f32[2,24,45], index: 0, kind: input, shape index: {}]   ;;  %s2396_s1 = inlined_call_operand.vmem [shape: f32[5,45,88], index: 1, kind: input, shape index: {}]   ;;  %s2397_s2 = inlined_call_operand.vmem [shape: f32[1,88], index: 2, kind: input, shape index: {}]   ;;  %s2398_s3 = inlined_call_operand.vmem [shape: f32[1,88], index: 3, kind: input, shape index: {}]   ;;  %s2399_s4 = inlined_call_operand.hbm [shape: f32[3,72,80], index: 4, kind: input, shape index: {}]   ;;  %s2400_s5 = inlined_call_operand.vmem [shape: f32[1,80], index: 5, kind: input, shape index: {}]   ;;  %s2401_s6 = inlined_call_operand.vmem [shape: f32[1,80], index: 6, kind: input, shape index: {}]   ;;  %s2402_s7 = inlined_call_operand.vmem [shape: f32[10,19], index: 7, kind: input, shape index: {}]   ;;  %s2403_s8 = inlined_call_operand.vmem [shape: f32[16,10], index: 8, kind: input, shape index: {}]   ;;  %s2404_s9 = inlined_call_operand.vmem [shape: f32[1,10], index: 9, kind: input, shape index: {}]   ;;  %s2405_s10 = inlined_call_operand.vmem [shape: f32[2,11,10], index: 10, kind: output, shape index: {}]  }
   0x1 LB: > { %s2114_s14 = sadd.s32 4294967295, %s2040_s13   ;;  %p1624_p0 = scmp.ge.s32.totalorder %s2040_s13, 1  ;;  %s2040_s13 = sphi %s2108_s13, %s21_s13  }
   0x2   : > { %p267_p1 = scmp.lt.s32.totalorder %s2040_s13, 3  ;;  %s2042_s15 = smov [#allocation9]  }
   0x3   : > { %s288_s16 = sshll.u32 %s2042_s15, 4  ;;  %p1975_p3 = scmp.eq.s32.totalorder %s2114_s14, 0  ;;  %s289_s16 = int_to_ptr.vmem [resolvable:$true] %s288_s16 }
   0x4   : > { %p2118_p2 = pnand %p1624_p0, %p267_p1  ;;  %s2015_s18 = scalar_lea.vmem %s289_s16, 3456 }
   0x5   : > { %p2016_p7 = scmp.ne.s32.totalorder %s289_s16, %s2015_s18  ;;  %p2023_p10 = scmp.lt.s32.totalorder %s289_s16, %s289_s16 }
   0x6   : > { %p1971_p4 = pneg %p2118_p2  ;;  %p2024_p11 = scmp.lt.s32.totalorder %s2015_s18, %s2015_s18 }
   0x8   : > { %p1972_p5 = pnand %p1975_p3, %p1971_p4  ;;  %p2025_p12 = por %p2024_p11, %p2023_p10 }
   0xa   : > { %p2006_p6 = pneg %p1972_p5 }
   0xc   : > { %p2018_p8 = pnand %p2016_p7, %p2006_p6 }
   0xe   : > { %p2019_p9 = pneg %p2018_p8 }
  0x10   : > { %p2026_p13 = pnand %p2025_p12, %p2019_p9 }
  0x12   : > { %2029 = shalt.err (!%p2026_p13)
}
  0x13   : > { %s2043_s19 = smov 128   ;;  %s2044_s20 = smov 8  }
  0x14   : > { %1974 = dma.hbm_to_vmem [thread:$0]  (!%p1972_p5), %s2399_s4, 3456, %s289_s16, [#allocation10], %s2043_s19, %s2043_s19, %s2044_s20  }
  0x15   : > { %327 = sbr.rel (%p2118_p2) target bundleno = 1533 (0x5fd), region = 60 }
  0x1a   : > { %2035 = dma.done.wait (%p1975_p3), [#allocation10], 3456  }
  0x1b   : > { %2037 = vsyncadd (%p1975_p3), [#allocation10], 4294963840  ;;  %v2045_v0 = vmov 0.0   ;;  %vm2046_vm0 = vmmov 0   ;;  %p365_p0 = scmp.lt.s32.totalorder %s2114_s14, 1  ;;  %vm404_vm1 = vcmask 1044480  }
  0x1c   : > { %1782 = vmatprep.subr.mxu1 %v2045_v0  ;;  %1794 = vmatprep.mubr.msk.f32.mxu1 %vm2046_vm0, %v2045_v0  ;;  %v1637_v1 = vld [vmem:[%s2396_s1 + $0x58] sm:$0x1f]  ;;  %v1636_v2 = vld [vmem:[%s2396_s1 + $0x50] sm:$0xff]  ;;  %v1635_v3 = vld [vmem:[%s2396_s1 + $0x48] sm:$0xff]  ;;  %vm394_vm2 = vcmask 367616   ;;  %vm923_vm3 = vcmask 712704  }
  0x1d   : > { %1824 = vmatprep.subr.mxu0 %v2045_v0  ;;  %1836 = vmatprep.mubr.msk.f32.mxu0 %vm2046_vm0, %v2045_v0  ;;  %s2408_s14 = smov (!%p365_p0, %s2114_s14), 1  ;;  %v1651_v4 = vld [vmem:[%s2396_s1 + $0x88] sm:$0x1f]  ;;  %v1650_v5 = vld [vmem:[%s2396_s1 + $0x80] sm:$0xff]  ;;  %v1649_v7 = vld [vmem:[%s2396_s1 + $0x78] sm:$0xff]  ;;  %vm918_vm4 = vcmask 719872  }
  0x1e   : > { %1783 = vmatpush3.msk.msra.mxu1 %vm404_vm1, %v1637_v1  ;;  %s1966_s29 = smul.u32 24, %s2408_s14  ;;  %1825 = vmatpush3.msk.msra.mxu0 %vm404_vm1, %v1651_v4  ;;  %v1634_v6 = vld [vmem:[%s2396_s1 + $0x40] sm:$0xff]  ;;  %v1633_v8 = vld [vmem:[%s2396_s1 + $0x38] sm:$0xff]  ;;  %v1648_v9 = vld [vmem:[%s2396_s1 + $0x70] sm:$0xff]  ;;  %v2047_v46 = vmov -1e+30  }
  0x1f   : > { %1784 = vmatprep.subr.mxu1 %v2045_v0  ;;  %1826 = vmatprep.subr.mxu0 %v2045_v0  ;;  %v1632_v10 = vld [vmem:[%s2396_s1 + $0x30] sm:$0xff]  ;;  %v1647_v11 = vld [vmem:[%s2396_s1 + $0x68] sm:$0xff]  ;;  %v382_v14 = vld [vmem:[%s2396_s1 + $0x20] sm:$0xff]  ;;  %924 = vst.msk [vmem:[#allocation2 + $0x14] sm:$0x1] %vm923_vm3, %v2047_v46  ;;  %vm921_vm5 = vcmask 715776  }
  0x20   : > { %1785 = vmatpush3.msra.mxu1 %v1636_v2  ;;  %1827 = vmatpush3.msra.mxu0 %v1650_v5  ;;  %s2180_s24 = scalar_lea.vmem %s2395_s0, %s1966_s29  ;;  %v383_v13 = vld [vmem:[%s2396_s1 + $0x28] sm:$0x1f]  ;;  %v1646_v15 = vld [vmem:[%s2396_s1 + $0x60] sm:$0xff]  ;;  %v381_v17 = vld [vmem:[%s2396_s1 + $0x18] sm:$0xff]  ;;  %s2048_s20 = smov 120   ;;  %vm986_vm6 = vcmask 154624  }
  0x21   : > { %1786 = vmatprep.subr.mxu1 %v2045_v0  ;;  %1828 = vmatprep.subr.mxu0 %v2045_v0  ;;  %v384_v12 = vld [vmem:[%s2180_s24 + $0x1] sm:$0xff]  ;;  %v385_v16 = vld [vmem:[%s2180_s24 + $0x9] sm:$0xff]  ;;  %v386_v20 = vld [vmem:[%s2180_s24 + $0x11] sm:$0xf]  ;;  %s2049_s21 = smov 112   ;;  %vm958_vm7 = vcmask 585728  }
  0x22   : > { %1787 = vmatpush3.msra.mxu1 %v1635_v3  ;;  %1829 = vmatpush3.msra.mxu0 %v1649_v7  ;;  %v580_v18 = vld [vmem:[%s2180_s24 + $0x2] sm:$0xff]  ;;  %v380_v19 = vld [vmem:[%s2396_s1 + $0x10] sm:$0xff]  ;;  %v1661_v25 = vld [vmem:[%s2396_s1 + $0xb8] sm:$0x1f]  ;;  %vm955_vm8 = vcmask 588800   ;;  %vm977_vm9 = vcmask 583680  }
  0x23   : > { %1788 = vmatprep.subr.mxu1 %v2045_v0  ;;  %1830 = vmatprep.subr.mxu0 %v2045_v0  ;;  %v379_v21 = vld [vmem:[%s2396_s1 + $0x8] sm:$0xff]  ;;  %v378_v23 = vld [vmem:[%s2396_s1] sm:$0xff]  ;;  %v1660_v26 = vld [vmem:[%s2396_s1 + $0xb0] sm:$0xff]  ;;  %vm993_vm10 = vcmask 1042432   ;;  %vm979_vm11 = vcmask 581632   ;;  %vm1073_vm12 = vcmask 582656  }
  0x24   : > { %1789 = vmatpush3.msra.mxu1 %v1634_v6  ;;  %1831 = vmatpush3.msra.mxu0 %v1648_v9  ;;  %v1671_v22 = vld [vmem:[%s2396_s1 + $0xe8] sm:$0x1f]  ;;  %v375_v24 = vld [vmem:[%s2180_s24] sm:$0xff]  ;;  %v1669_v31 = vld [vmem:[%s2396_s1 + $0xd8] sm:$0xff]  ;;  %980 = vst.msk [vmem:[#allocation5] sm:$0x1] %vm979_vm11, %v2045_v0 }
  0x25   : > { %1790 = vmatprep.subr.mxu1 %v2045_v0  ;;  %1832 = vmatprep.subr.mxu0 %v2045_v0  ;;  %v1670_v27 = vld [vmem:[%s2396_s1 + $0xe0] sm:$0xff]  ;;  %v376_v28 = vld [vmem:[%s2180_s24 + $0x8] sm:$0xff]  ;;  %v1668_v33 = vld [vmem:[%s2396_s1 + $0xd0] sm:$0xff]  ;;  %1075 = vst.msk [vmem:[#allocation5 + $0xb] sm:$0x1] %vm979_vm11, %v2045_v0  ;;  %vm1378_vm13 = vcmask 648192  }
  0x26   : > { %1791 = vmatpush3.msra.mxu1 %v1633_v8  ;;  %1833 = vmatpush3.msra.mxu0 %v1647_v11  ;;  %v581_v29 = vld [vmem:[%s2180_s24 + $0xa] sm:$0xff]  ;;  %v1658_v32 = vld [vmem:[%s2396_s1 + $0xa0] sm:$0xff]  ;;  %v582_v35 = vld [vmem:[%s2180_s24 + $0x12] sm:$0xf]  ;;  %vm1376_vm14 = vcmask 654336   ;;  %s2050_s11 = smov 96  }
  0x27   : > { %1792 = vmatprep.subr.mxu1 %v2045_v0  ;;  %1834 = vmatprep.subr.mxu0 %v2045_v0  ;;  %v1659_v30 = vld [vmem:[%s2396_s1 + $0xa8] sm:$0xff]  ;;  %v377_v34 = vld [vmem:[%s2180_s24 + $0x10] sm:$0xf]  ;;  %v1657_v36 = vld [vmem:[%s2396_s1 + $0x98] sm:$0xff]  ;;  %s2051_s12 = smov 80   ;;  %s2052_s18 = smov 64  }
  0x28   : > { %1793 = vmatpush3.msra.mxu1 %v1632_v10  ;;  %1835 = vmatpush3.msra.mxu0 %v1646_v15  ;;  %v1667_v37 = vld [vmem:[%s2396_s1 + $0xc8] sm:$0xff]  ;;  %v1656_v38 = vld [vmem:[%s2396_s1 + $0x90] sm:$0xff]  ;;  %v1666_v39 = vld [vmem:[%s2396_s1 + $0xc0] sm:$0xff]  ;;  %vm1418_vm15 = vcmask 123904   ;;  %vm1525_vm3 = vcmask 80896  }
  0x29   : > { %1795 = vmatmul.mubr.msk.f32.vlgmr.msra.gmra.mxu1 %vm394_vm2, %v384_v12  ;;  %1803 = vmatprep.subr.mxu1 %v2045_v0  ;;  %v685_v40 = vld [vmem:[%s2180_s24 + $0x3] sm:$0xff]  ;;  %v686_v42 = vld [vmem:[%s2180_s24 + $0xb] sm:$0xff]  ;;  %v687_v44 = vld [vmem:[%s2180_s24 + $0x13] sm:$0xf] }
  0x2a   : > { %1804 = vmatpush3.msk.msra.mxu1 %vm404_vm1, %v383_v13  ;;  %1797 = vmatprep.mubr.msk.f32.mxu1 %vm2046_vm0, %v2045_v0  ;;  %v790_v41 = vld [vmem:[%s2180_s24 + $0x4] sm:$0xff]  ;;  %v791_v43 = vld [vmem:[%s2180_s24 + $0xc] sm:$0xff]  ;;  %v792_v45 = vld [vmem:[%s2180_s24 + $0x14] sm:$0xf] }
  0x2b   : > { %1805 = vmatprep.subr.mxu1 %v2045_v0  ;;  %1837 = vmatmul.mubr.msk.f32.vlgmr.msra.gmra.mxu0 %vm394_vm2, %v580_v18  ;;  %v1676_v8 = vld [vmem:[%s2397_s2] ss:$0 sm:$0xff] }
  0x2c   : > { %1806 = vmatpush3.msra.mxu1 %v382_v14  ;;  %1866 = vmatprep.subr.mxu0 %v2045_v0  ;;  %v1677_v14 = vld [vmem:[%s2398_s3] ss:$0 sm:$0xff] }
  0x2d   : > { %1798 = vmatmul.mubr.msk.f32.gmra.mxu1 %vm394_vm2, %v385_v16  ;;  %1807 = vmatprep.subr.mxu1 %v2045_v0 }
  0x2e   : > { %1808 = vmatpush3.msra.mxu1 %v381_v17  ;;  %1800 = vmatprep.mubr.msk.f32.mxu1 %vm2046_vm0, %v2045_v0 }
  0x2f   : > { %1809 = vmatprep.subr.mxu1 %v2045_v0  ;;  %1867 = vmatpush3.msk.msra.mxu0 %vm404_vm1, %v1671_v22 }
  0x30   : > { %1810 = vmatpush3.msra.mxu1 %v380_v19  ;;  %1868 = vmatprep.subr.mxu0 %v2045_v0 }
  0x31   : > { %1801 = vmatmul.mubr.msk.f32.gmra.mxu1 %vm394_vm2, %v386_v20  ;;  %1811 = vmatprep.subr.mxu1 %v2045_v0 }
  0x32   : > { %1812 = vmatpush3.msra.mxu1 %v379_v21  ;;  %1815 = vmatprep.mubr.msk.f32.mxu1 %vm2046_vm0, %v2045_v0 }
  0x33   : > { %1813 = vmatprep.subr.mxu1 %v2045_v0  ;;  %1839 = vmatprep.mubr.msk.f32.mxu0 %vm2046_vm0, %v2045_v0 }
  0x34   : > { %1814 = vmatpush3.msra.mxu1 %v378_v23  ;;  %1869 = vmatpush3.msra.mxu0 %v1670_v27 }
  0x35   : > { %1816 = vmatmul.mubr.msk.f32.vlgmr.msra.gmra.mxu1 %vm394_vm2, %v375_v24  ;;  %1845 = vmatprep.subr.mxu1 %v2045_v0 }
  0x36   : > { %1846 = vmatpush3.msk.msra.mxu1 %vm404_vm1, %v1661_v25  ;;  %1818 = vmatprep.mubr.msk.f32.mxu1 %vm2046_vm0, %v2045_v0  ;;  %vm1421_vm1 = vcmask 122880  }
  0x37   : > { %1847 = vmatprep.subr.mxu1 %v2045_v0  ;;  %1840 = vmatmul.mubr.msk.f32.gmra.mxu0 %vm394_vm2, %v581_v29 }
  0x38   : > { %1848 = vmatpush3.msra.mxu1 %v1660_v26  ;;  %1870 = vmatprep.subr.mxu0 %v2045_v0 }
  0x39   : > { %1819 = vmatmul.mubr.msk.f32.gmra.mxu1 %vm394_vm2, %v376_v28  ;;  %1849 = vmatprep.subr.mxu1 %v2045_v0 }
  0x3a   : > { %1850 = vmatpush3.msra.mxu1 %v1659_v30  ;;  %1871 = vmatpush3.msra.mxu0 %v1669_v31 }
  0x3b   : > { %1851 = vmatprep.subr.mxu1 %v2045_v0  ;;  %1872 = vmatprep.subr.mxu0 %v2045_v0 }
  0x3c   : > { %1821 = vmatprep.mubr.msk.f32.mxu1 %vm2046_vm0, %v2045_v0  ;;  %1842 = vmatprep.mubr.msk.f32.mxu0 %vm2046_vm0, %v2045_v0 }
  0x3d   : > { %1852 = vmatpush3.msra.mxu1 %v1658_v32  ;;  %1873 = vmatpush3.msra.mxu0 %v1668_v33 }
  0x3e   : > { %1822 = vmatmul.mubr.msk.f32.gmra.mxu1 %vm394_vm2, %v377_v34  ;;  %1843 = vmatmul.mubr.msk.f32.gmra.mxu0 %vm394_vm2, %v582_v35 }
  0x3f   : > { %1853 = vmatprep.subr.mxu1 %v2045_v0  ;;  %1874 = vmatprep.subr.mxu0 %v2045_v0 }
  0x40   : > { %1854 = vmatpush3.msra.mxu1 %v1657_v36  ;;  %1875 = vmatpush3.msra.mxu0 %v1667_v37 }
  0x41   : > { %1855 = vmatprep.subr.mxu1 %v2045_v0  ;;  %1876 = vmatprep.subr.mxu0 %v2045_v0 }
  0x42   : > { %1856 = vmatpush3.msra.mxu1 %v1656_v38  ;;  %1857 = vmatprep.mubr.msk.f32.mxu1 %vm2046_vm0, %v2045_v0 }
  0x43   : > { %1877 = vmatpush3.msra.mxu0 %v1666_v39  ;;  %1878 = vmatprep.mubr.msk.f32.mxu0 %vm2046_vm0, %v2045_v0 }
  0x44   : > { %1858 = vmatmul.mubr.msk.f32.vlgmr.msra.gmra.mxu1 %vm394_vm2, %v685_v40  ;;  %1879 = vmatmul.mubr.msk.f32.vlgmr.msra.gmra.mxu0 %vm394_vm2, %v790_v41  ;;  %v981_v40 = vld [vmem:[%s2402_s7] sm:$0xff]  ;;  %v1098_v41 = vld [vmem:[#allocation9 + $0x88] sm:$0xff] }
  0x45   : > { %1860 = vmatprep.mubr.msk.f32.mxu1 %vm2046_vm0, %v2045_v0  ;;  %1881 = vmatprep.mubr.msk.f32.mxu0 %vm2046_vm0, %v2045_v0 }
  0x46   : > { %1896 = vmatprep.subr.mxu0 %v1098_v41 }
  0x47   : > { %1897 = vmatpush3.msra.mxu0 %v1098_v41  ;;  %v1264_v41 = vld [vmem:[#allocation9 + $0x90] sm:$0xff] }
  0x48   : > { %1861 = vmatmul.mubr.msk.f32.gmra.mxu1 %vm394_vm2, %v686_v42  ;;  %1882 = vmatmul.mubr.msk.f32.gmra.mxu0 %vm394_vm2, %v791_v43  ;;  %v1097_v42 = vld [vmem:[#allocation9 + $0x80] sm:$0xff]  ;;  %v1096_v43 = vld [vmem:[#allocation9 + $0x78] sm:$0xff] }
  0x49   : > { %1863 = vmatprep.mubr.msk.f32.mxu1 %vm2046_vm0, %v2045_v0  ;;  %1884 = vmatprep.mubr.msk.f32.mxu0 %vm2046_vm0, %v2045_v0  ;;  %v1078_v0 = vld [vmem:[#allocation9] sm:$0xff]  ;;  %vm1416_vm0 = vcmask 130048  }
  0x4a   : > { %1898 = vmatprep.subr.mxu0 %v1097_v42 }
  0x4b   : > { %1899 = vmatpush3.msra.mxu0 %v1097_v42 }
  0x4c   : > { %1864 = vmatmul.mubr.msk.f32.gmra.mxu1 %vm394_vm2, %v687_v44  ;;  %1885 = vmatmul.mubr.msk.f32.gmra.mxu0 %vm394_vm2, %v792_v45  ;;  %v1095_v44 = vld [vmem:[#allocation9 + $0x70] sm:$0xff]  ;;  %vm1529_vm2 = vcmask 75776  }
  0x4d   : > { %1893 = vmatprep.mubr.msk.f32.mxu1 %vm986_vm6, %v981_v40  ;;  %1900 = vmatprep.subr.mxu0 %v1096_v43  ;;  %v1265_v40 = vld [vmem:[#allocation9 + $0x98] sm:$0xff] }
  0x4e   : > { %1901 = vmatpush3.msra.mxu0 %v1096_v43 }
  0x4f   : > { %1902 = vmatprep.subr.mxu0 %v1095_v44 }
  0x50   : > { %1903 = vmatpush3.msra.mxu0 %v1095_v44 }
  0xe9   : > { %v474_v47 = vpop.f32.mrf.mxu1 }
  0xeb   : > { %v1796_v48 = vpop.f32.mrf.mxu1  ;;  %v668_v51 = vpop.f32.mrf.mxu0 }
  0xed   : > { %v479_v49 = vpop.f32.mrf.mxu1  ;;  %v1838_v53 = vpop.f32.mrf.mxu0 }
  0xef   : > { %v1799_v50 = vpop.f32.mrf.mxu1 }
  0xf1   : > { %v484_v52 = vpop.f32.mrf.mxu1 }
  0xf3   : > { %v1802_v54 = vpop.f32.mrf.mxu1 }
  0xf5   : > { %v566_v55 = vpop.f32.mrf.mxu1 }
  0xf6   : > { %v567_v63 = vadd.f32 %v566_v55, %v474_v47 }
  0xf7   : > { %v1817_v56 = vpop.f32.mrf.mxu1  ;;  %v673_v58 = vpop.f32.mrf.mxu0 }
  0xf8   : > { %v682_v3 = vadd.f32 %v668_v51, %v567_v63 }
  0xf9   : > { %v571_v57 = vpop.f32.mrf.mxu1  ;;  %v1841_v60 = vpop.f32.mrf.mxu0 }
  0xfa   : > { %v572_v4 = vadd.f32 %v571_v57, %v479_v49 }
  0xfb   : > { %v1820_v59 = vpop.f32.mrf.mxu1 }
  0xfc   : > { %v683_v11 = vadd.f32 %v673_v58, %v572_v4 }
  0xfe   : > { %v576_v61 = vpop.f32.mrf.mxu1  ;;  %v678_v62 = vpop.f32.mrf.mxu0 }
  0xff   : > { %v577_v12 = vadd.f32 %v576_v61, %v484_v52 }
 0x100   : > { %v1823_v1 = vpop.f32.mrf.mxu1  ;;  %v1844_v2 = vpop.f32.mrf.mxu0 }
 0x101   : > { %v684_v21 = vadd.f32 %v678_v62, %v577_v12  ;;  %v982_v12 = vld [vmem:[%s2402_s7 + $0x8] sm:$0x3] }
 0x104   : > { %v773_v5 = vpop.f32.mrf.mxu1  ;;  %v878_v6 = vpop.f32.mrf.mxu0 }
 0x105   : > { %v787_v7 = vadd.f32 %v773_v5, %v682_v3 }
 0x106   : > { %v1859_v9 = vpop.f32.mrf.mxu1  ;;  %v1880_v10 = vpop.f32.mrf.mxu0 }
 0x107   : > { %v892_v13 = vadd.f32 %v878_v6, %v787_v7 }
 0x108   : > { %v778_v15 = vpop.f32.mrf.mxu1  ;;  %v883_v16 = vpop.f32.mrf.mxu0 }
 0x109   : > { %v902_v17 = vmul.f32 %v1676_v8, %v892_v13  ;;  %v788_v18 = vadd.f32 %v778_v15, %v683_v11  ;;  %v1086_v13 = vld [vmem:[#allocation9 + $0x40] sm:$0xff]  ;;  %v1084_v15 = vld [vmem:[#allocation9 + $0x30] sm:$0xff] }
 0x10a   : > { %v1862_v19 = vpop.f32.mrf.mxu1  ;;  %v1883_v20 = vpop.f32.mrf.mxu0 }
 0x10b   : > { %v912_v22 = vadd.f32 %v1677_v14, %v902_v17  ;;  %v893_v23 = vadd.f32 %v883_v16, %v788_v18  ;;  %v1083_v16 = vld [vmem:[#allocation9 + $0x28] sm:$0xff]  ;;  %v1082_v18 = vld [vmem:[#allocation9 + $0x20] sm:$0xff]  ;;  %v1092_v20 = vld [vmem:[#allocation9 + $0x58] sm:$0xff] }
 0x10c   : > { %v783_v24 = vpop.f32.mrf.mxu1  ;;  %v888_v25 = vpop.f32.mrf.mxu0  ;;  %v1094_v17 = vld [vmem:[#allocation9 + $0x68] sm:$0xff]  ;;  %v1093_v19 = vld [vmem:[#allocation9 + $0x60] sm:$0xff] }
 0x10d   : > { %v915_v26 = vmax.f32 %v912_v22, 0.0  ;;  %v903_v27 = vmul.f32 %v1676_v8, %v893_v23  ;;  %v789_v28 = vadd.f32 %v783_v24, %v684_v21  ;;  %1904 = vmatprep.subr.mxu0 %v1094_v17  ;;  %v1081_v21 = vld [vmem:[#allocation9 + $0x18] sm:$0xff]  ;;  %v1091_v22 = vld [vmem:[#allocation9 + $0x50] sm:$0xff]  ;;  %v1079_v24 = vld [vmem:[#allocation9 + $0x8] sm:$0xff] }
 0x10e   : > { %v1865_v29 = vpop.f32.mrf.mxu1  ;;  %v1886_v30 = vpop.f32.mrf.mxu0  ;;  %1905 = vmatpush3.msra.mxu0 %v1094_v17  ;;  %v1080_v23 = vld [vmem:[#allocation9 + $0x10] sm:$0xff] }
 0x10f   : > { %919 = vst.msk [vmem:[#allocation2] sm:$0xff] %vm918_vm4, %v915_v26  ;;  %v913_v31 = vadd.f32 %v1677_v14, %v903_v27  ;;  %v894_v32 = vadd.f32 %v888_v25, %v789_v28  ;;  %1906 = vmatprep.subr.mxu0 %v1093_v19  ;;  %v1090_v25 = vld [vmem:[#allocation9 + $0x48] sm:$0xff]  ;;  %v1272_v26 = vld [vmem:[#allocation9 + $0xd0] sm:$0xff] }
 0x110   : > { %1907 = vmatpush3.msra.mxu0 %v1093_v19 }
 0x111   : > { %v916_v33 = vmax.f32 %v913_v31, 0.0  ;;  %v904_v34 = vmul.f32 %v1676_v8, %v894_v32  ;;  %1908 = vmatprep.subr.mxu0 %v1092_v20 }
 0x112   : > { %1909 = vmatpush3.msra.mxu0 %v1092_v20 }
 0x113   : > { %920 = vst.msk [vmem:[#allocation2 + $0x8] sm:$0xff] %vm918_vm4, %v916_v33  ;;  %v914_v35 = vadd.f32 %v1677_v14, %v904_v34  ;;  %v1085_v14 = vld [vmem:[#allocation9 + $0x38] sm:$0xff]  ;;  %1910 = vmatprep.subr.mxu0 %v1091_v22  ;;  %v1271_v33 = vld [vmem:[#allocation9 + $0xc8] sm:$0xff] }
 0x114   : > { %1911 = vmatpush3.msra.mxu0 %v1091_v22 }
 0x115   : > { %v917_v36 = vmax.f32 %v914_v35, 0.0  ;;  %1912 = vmatprep.subr.mxu0 %v1090_v25  ;;  %v1270_v35 = vld [vmem:[#allocation9 + $0xc0] sm:$0xff] }
 0x116   : > { %v925_v37 = vld [vmem:[#allocation2] sm:$0xff]  ;;  %1913 = vmatpush3.msra.mxu0 %v1090_v25 }
 0x117   : > { %922 = vst.msk [vmem:[#allocation2 + $0x10] sm:$0xf] %vm921_vm5, %v917_v36  ;;  %931 = vrot.lane.b32.xlu1 %v925_v37, %s2048_s20  ;;  %1938 = vmatprep.subr.mxu0 %v1272_v26  ;;  %v1269_v36 = vld [vmem:[#allocation9 + $0xb8] sm:$0xff] }
 0x11a   : > { %v926_v38 = vld [vmem:[#allocation2 + $0x8] sm:$0xff] }
 0x11b   : > { %933 = vrot.lane.b32.xlu0 %v926_v38, %s2048_s20 }
 0x11e   : > { %v927_v39 = vld [vmem:[#allocation2 + $0x10] sm:$0x1f] }
 0x11f   : > { %947 = vrot.lane.b32.xlu1 %v927_v39, %s2049_s21  ;;  %935 = vrot.lane.b32.xlu0 %v927_v39, %s2048_s20 }
 0x123   : > { %943 = vrot.lane.b32.xlu1 %v925_v37, %s2049_s21  ;;  %945 = vrot.lane.b32.xlu0 %v926_v38, %s2049_s21 }
 0x189   : > { %v932_v45 = vpop.permute.xlu1 %931 }
 0x18a   : > { %v940_v50 = vmax.f32 %v925_v37, %v932_v45  ;;  %v1268_v37 = vld [vmem:[#allocation9 + $0xb0] sm:$0xff] }
 0x18d   : > { %v934_v46 = vpop.permute.xlu0 %933 }
 0x18e   : > { %v941_v51 = vmax.f32 %v926_v38, %v934_v46  ;;  %v1267_v38 = vld [vmem:[#allocation9 + $0xa8] sm:$0xff] }
 0x191   : > { %v948_v47 = vpop.permute.xlu1 %947  ;;  %v936_v48 = vpop.permute.xlu0 %935 }
 0x192   : > { %v942_v49 = vmax.f32 %v927_v39, %v936_v48  ;;  %v1266_v39 = vld [vmem:[#allocation9 + $0xa0] sm:$0xff] }
 0x194   : > { %v954_v52 = vmax.f32 %v942_v49, %v948_v47  ;;  %v1687_v49 = vld [vmem:[%s2400_s5] ss:$0 sm:$0xff] }
 0x195   : > { %v944_v53 = vpop.permute.xlu1 %943  ;;  %v946_v54 = vpop.permute.xlu0 %945 }
 0x196   : > { %959 = vst.msk [vmem:[#allocation3 + $0x10] sm:$0x1f] %vm958_vm7, %v954_v52  ;;  %v952_v55 = vmax.f32 %v940_v50, %v944_v53  ;;  %v953_v56 = vmax.f32 %v941_v51, %v946_v54  ;;  %v1688_v52 = vld [vmem:[%s2401_s6] ss:$0 sm:$0xff] }
 0x198   : > { %956 = vst.msk [vmem:[#allocation3] sm:$0xff] %vm955_vm8, %v952_v55  ;;  %957 = vst.msk [vmem:[#allocation3 + $0x8] sm:$0xff] %vm955_vm8, %v953_v56 }
 0x19d   : > { %v962_v57 = vld [vmem:[#allocation3 + $0x10] sm:$0x7] }
 0x19e   : > { %v965_v58 = vld [vmem:[#allocation3 + $0x11] sm:$0x7] }
 0x19f   : > { %v968_v59 = vmax.f32 %v962_v57, %v965_v58  ;;  %v971_v60 = vld [vmem:[#allocation3 + $0x12] sm:$0x7]  ;;  %v960_v61 = vld [vmem:[#allocation3] sm:$0xff]  ;;  %v961_v62 = vld [vmem:[#allocation3 + $0x8] sm:$0xff] }
 0x1a0   : > { %v963_v63 = vld [vmem:[#allocation3 + $0x1] sm:$0xff]  ;;  %v964_v1 = vld [vmem:[#allocation3 + $0x9] sm:$0xff] }
 0x1a1   : > { %v966_v2 = vmax.f32 %v960_v61, %v963_v63  ;;  %v974_v3 = vmax.f32 %v968_v59, %v971_v60  ;;  %v967_v4 = vmax.f32 %v961_v62, %v964_v1  ;;  %v969_v5 = vld [vmem:[#allocation3 + $0x2] sm:$0xff]  ;;  %v970_v6 = vld [vmem:[#allocation3 + $0xa] sm:$0xff] }
 0x1a2   : > { %v1436_v63 = vld [vmem:[%s2403_s8 + $0x8] sm:$0xff]  ;;  %v1435_v1 = vld [vmem:[%s2403_s8] sm:$0xff] }
 0x1a3   : > { %v972_v7 = vmax.f32 %v966_v2, %v969_v5  ;;  %978 = vst.msk [vmem:[#allocation4 + $0x10] sm:$0x7] %vm977_vm9, %v974_v3  ;;  %v973_v8 = vmax.f32 %v967_v4, %v970_v6 }
 0x1a5   : > { %975 = vst.msk [vmem:[#allocation4] sm:$0xff] %vm955_vm8, %v972_v7  ;;  %976 = vst.msk [vmem:[#allocation4 + $0x8] sm:$0xff] %vm955_vm8, %v973_v8 }
 0x1aa   : > { %v985_v9 = vld [vmem:[#allocation4 + $0x10] sm:$0x7] }
 0x1ab   : > { %1887 = vmatprep.subr.msk.mxu1 %vm993_vm10, %v985_v9 }
 0x1ac   : > { %1888 = vmatpush3.msk.msra.mxu1 %vm993_vm10, %v985_v9  ;;  %v984_v10 = vld [vmem:[#allocation4 + $0x8] sm:$0xff]  ;;  %v983_v11 = vld [vmem:[#allocation4] sm:$0xff] }
 0x1ad   : > { %1889 = vmatprep.subr.mxu1 %v984_v10 }
 0x1ae   : > { %1890 = vmatpush3.msra.mxu1 %v984_v10 }
 0x1af   : > { %1891 = vmatprep.subr.mxu1 %v983_v11 }
 0x1b0   : > { %1892 = vmatpush3.msra.mxu1 %v983_v11 }
 0x1b1   : > { %1894 = vmatmul.mubr.msk.f32.vlgmr.msra.gmra.mxu1 %vm986_vm6, %v982_v12  ;;  %1917 = vmatprep.subr.mxu1 %v1086_v13 }
 0x1b2   : > { %1918 = vmatpush3.msra.mxu1 %v1086_v13 }
 0x1b3   : > { %1919 = vmatprep.subr.mxu1 %v1085_v14 }
 0x1b4   : > { %1920 = vmatpush3.msra.mxu1 %v1085_v14 }
 0x1b5   : > { %1921 = vmatprep.subr.mxu1 %v1084_v15 }
 0x1b6   : > { %1922 = vmatpush3.msra.mxu1 %v1084_v15 }
 0x1b7   : > { %1923 = vmatprep.subr.mxu1 %v1083_v16 }
 0x1b8   : > { %1924 = vmatpush3.msra.mxu1 %v1083_v16 }
 0x1b9   : > { %1925 = vmatprep.subr.mxu1 %v1082_v18 }
 0x1ba   : > { %1926 = vmatpush3.msra.mxu1 %v1082_v18 }
 0x1bb   : > { %1927 = vmatprep.subr.mxu1 %v1081_v21 }
 0x1bc   : > { %1928 = vmatpush3.msra.mxu1 %v1081_v21 }
 0x1bd   : > { %1929 = vmatprep.subr.mxu1 %v1080_v23 }
 0x1be   : > { %1930 = vmatpush3.msra.mxu1 %v1080_v23 }
 0x1bf   : > { %1931 = vmatprep.subr.mxu1 %v1079_v24 }
 0x1c0   : > { %1932 = vmatpush3.msra.mxu1 %v1079_v24 }
 0x1c1   : > { %1933 = vmatprep.subr.mxu1 %v1078_v0 }
 0x1c2   : > { %1934 = vmatpush3.msra.mxu1 %v1078_v0 }
 0x271   : > { %v1895_v27 = vpop.f32.mrf.mxu1 }
 0x272   : > { %1074 = vst.msk [vmem:[#allocation5 + $0x9] sm:$0x3] %vm1073_vm12, %v1895_v27  ;;  %v1689_v27 = vld [vmem:[%s2404_s9] ss:$0 sm:$0xff] }
 0x273   : > { %v1063_v28 = vpop.f32.mrf.mxu1 }
 0x274   : > { %1072 = vst.msk [vmem:[#allocation5 + $0x1] sm:$0xff] %vm955_vm8, %v1063_v28 }
 0x279   : > { %v1088_v32 = vld [vmem:[#allocation5 + $0x9] sm:$0x3] }
 0x27a   : > { %v1262_v42 = vld [vmem:[#allocation5 + $0xa] sm:$0x3] }
 0x27b   : > { %v1087_v29 = vld [vmem:[#allocation5 + $0x1] sm:$0xff] }
 0x27c   : > { %v1076_v30 = vld [vmem:[#allocation5] sm:$0xff]  ;;  %v1077_v31 = vld [vmem:[#allocation5 + $0x8] sm:$0x3]  ;;  %1914 = vmatprep.mubr.msk.f32.mxu0 %vm955_vm8, %v1087_v29 }
 0x27d   : > { %1935 = vmatprep.mubr.msk.f32.mxu1 %vm955_vm8, %v1076_v30  ;;  %1915 = vmatmul.mubr.msk.f32.vlgmr.msra.gmra.mxu0 %vm955_vm8, %v1088_v32  ;;  %v1261_v34 = vld [vmem:[#allocation5 + $0x2] sm:$0xff] }
 0x27e   : > { %1936 = vmatmul.mubr.msk.f32.vlgmr.msra.gmra.mxu1 %vm955_vm8, %v1077_v31  ;;  %1939 = vmatpush3.msra.mxu0 %v1272_v26 }
 0x27f   : > { %1956 = vmatprep.mubr.msk.f32.mxu0 %vm955_vm8, %v1261_v34  ;;  %1940 = vmatprep.subr.mxu0 %v1271_v33 }
 0x280   : > { %1941 = vmatpush3.msra.mxu0 %v1271_v33 }
 0x281   : > { %1942 = vmatprep.subr.mxu0 %v1270_v35 }
 0x282   : > { %1943 = vmatpush3.msra.mxu0 %v1270_v35 }
 0x283   : > { %1944 = vmatprep.subr.mxu0 %v1269_v36 }
 0x284   : > { %1945 = vmatpush3.msra.mxu0 %v1269_v36 }
 0x285   : > { %1946 = vmatprep.subr.mxu0 %v1268_v37 }
 0x286   : > { %1947 = vmatpush3.msra.mxu0 %v1268_v37 }
 0x287   : > { %1948 = vmatprep.subr.mxu0 %v1267_v38 }
 0x288   : > { %1949 = vmatpush3.msra.mxu0 %v1267_v38 }
 0x289   : > { %1950 = vmatprep.subr.mxu0 %v1266_v39 }
 0x28a   : > { %1951 = vmatpush3.msra.mxu0 %v1266_v39 }
 0x28b   : > { %1952 = vmatprep.subr.mxu0 %v1265_v40 }
 0x28c   : > { %1953 = vmatpush3.msra.mxu0 %v1265_v40 }
 0x28d   : > { %1954 = vmatprep.subr.mxu0 %v1264_v41 }
 0x28e   : > { %1955 = vmatpush3.msra.mxu0 %v1264_v41 }
 0x28f   : > { %1957 = vmatmul.mubr.msk.f32.vlgmr.msra.gmra.mxu0 %vm955_vm8, %v1262_v42  ;;  %1959 = vmatprep.subr.mxu0 %v1436_v63 }
 0x290   : > { %1960 = vmatpush3.msra.mxu0 %v1436_v63 }
 0x291   : > { %1961 = vmatprep.subr.mxu0 %v1435_v1 }
 0x292   : > { %1962 = vmatpush3.msra.mxu0 %v1435_v1 }
 0x33d   : > { %v1916_v43 = vpop.f32.mrf.mxu0 }
 0x33e   : > { %v1937_v44 = vpop.f32.mrf.mxu1 }
 0x33f   : > { %v1171_v45 = vpop.f32.mrf.mxu0  ;;  %v1258_v47 = vadd.f32 %v1937_v44, %v1916_v43 }
 0x340   : > { %v1252_v46 = vpop.f32.mrf.mxu1 }
 0x341   : > { %v1253_v50 = vadd.f32 %v1252_v46, %v1171_v45 }
 0x34f   : > { %v1958_v48 = vpop.f32.mrf.mxu0 }
 0x350   : > { %v1355_v51 = vadd.f32 %v1958_v48, %v1258_v47 }
 0x351   : > { %v1345_v53 = vpop.f32.mrf.mxu0 }
 0x352   : > { %v1364_v54 = vmul.f32 %v1687_v49, %v1355_v51  ;;  %v1354_v55 = vadd.f32 %v1345_v53, %v1253_v50 }
 0x354   : > { %v1373_v56 = vadd.f32 %v1688_v52, %v1364_v54  ;;  %v1363_v57 = vmul.f32 %v1687_v49, %v1354_v55 }
 0x356   : > { %v1375_v58 = vmax.f32 %v1373_v56, 0.0  ;;  %v1372_v59 = vadd.f32 %v1688_v52, %v1363_v57 }
 0x358   : > { %1379 = vst.msk [vmem:[#allocation6 + $0x8] sm:$0x3] %vm1378_vm13, %v1375_v58  ;;  %v1374_v60 = vmax.f32 %v1372_v59, 0.0 }
 0x35a   : > { %1377 = vst.msk [vmem:[#allocation6] sm:$0xff] %vm1376_vm14, %v1374_v60 }
 0x35f   : > { %v1381_v61 = vld [vmem:[#allocation6 + $0x8] sm:$0x3] }
 0x360   : > { %1386 = vrot.lane.b32.xlu1 %v1381_v61, %s2049_s21 }
 0x361   : > { %v1380_v62 = vld [vmem:[#allocation6] sm:$0xff] }
 0x362   : > { %1384 = vrot.lane.b32.xlu0 %v1380_v62, %s2049_s21  ;;  %s1694_s21 = sshll.u32 %s2408_s14, 4 }
 0x363   : > { %s374_s25 = scalar_lea.vmem %s2405_s10, %s1694_s21 }
 0x364   : > { %1394 = vrot.lane.b32.xlu1 %v1381_v61, %s2050_s11 }
 0x366   : > { %1392 = vrot.lane.b32.xlu0 %v1380_v62, %s2050_s11 }
 0x368   : > { %1402 = vrot.lane.b32.xlu1 %v1381_v61, %s2051_s12 }
 0x36a   : > { %1400 = vrot.lane.b32.xlu0 %v1380_v62, %s2051_s12 }
 0x36c   : > { %1410 = vrot.lane.b32.xlu1 %v1381_v61, %s2052_s18 }
 0x36e   : > { %1408 = vrot.lane.b32.xlu0 %v1380_v62, %s2052_s18 }
 0x3d2   : > { %v1387_v2 = vpop.permute.xlu1 %1386 }
 0x3d3   : > { %v1391_v6 = vmax.f32 %v1381_v61, %v1387_v2 }
 0x3d4   : > { %v1385_v3 = vpop.permute.xlu0 %1384 }
 0x3d5   : > { %v1390_v8 = vmax.f32 %v1380_v62, %v1385_v3 }
 0x3d6   : > { %v1395_v4 = vpop.permute.xlu1 %1394 }
 0x3d7   : > { %v1399_v9 = vmax.f32 %v1391_v6, %v1395_v4 }
 0x3d8   : > { %v1393_v5 = vpop.permute.xlu0 %1392 }
 0x3d9   : > { %v1398_v11 = vmax.f32 %v1390_v8, %v1393_v5 }
 0x3da   : > { %v1403_v7 = vpop.permute.xlu1 %1402 }
 0x3db   : > { %v1407_v12 = vmax.f32 %v1399_v9, %v1403_v7 }
 0x3dc   : > { %v1401_v10 = vpop.permute.xlu0 %1400 }
 0x3dd   : > { %v1406_v14 = vmax.f32 %v1398_v11, %v1401_v10 }
 0x3de   : > { %v1411_v13 = vpop.permute.xlu1 %1410 }
 0x3df   : > { %v1415_v15 = vmax.f32 %v1407_v12, %v1411_v13 }
 0x3e0   : > { %v1409_v16 = vpop.permute.xlu0 %1408 }
 0x3e1   : > { %1419 = vst.msk [vmem:[#allocation7 + $0x8] sm:$0x3] %vm1418_vm15, %v1415_v15  ;;  %v1414_v17 = vmax.f32 %v1406_v14, %v1409_v16 }
 0x3e3   : > { %1417 = vst.msk [vmem:[#allocation7] sm:$0xff] %vm1416_vm0, %v1414_v17 }
 0x3e8   : > { %v1424_v18 = vld [vmem:[#allocation7 + $0x8] sm:$0x1]  ;;  %v1426_v19 = vld [vmem:[#allocation7 + $0x9] sm:$0x1] }
 0x3e9   : > { %v1431_v20 = vld [vmem:[#allocation7 + $0x9] sm:$0x1]  ;;  %v1428_v21 = vmax.f32 %v1424_v18, %v1426_v19 }
 0x3ea   : > { %1432 = vst.msk [vmem:[#allocation8 + $0xa] sm:$0x1] %vm1421_vm1, %v1431_v20  ;;  %v1420_v22 = vld [vmem:[#allocation7] sm:$0x1]  ;;  %v1425_v24 = vld [vmem:[#allocation7 + $0x1] sm:$0xff] }
 0x3eb   : > { %v1423_v23 = vld [vmem:[#allocation7] sm:$0xff]  ;;  %1422 = vst.msk [vmem:[#allocation8] sm:$0x1] %vm1421_vm1, %v1420_v22  ;;  %1430 = vst.msk [vmem:[#allocation8 + $0x9] sm:$0x1] %vm1421_vm1, %v1428_v21 }
 0x3ec   : > { %v1427_v25 = vmax.f32 %v1423_v23, %v1425_v24 }
 0x3ee   : > { %1429 = vst.msk [vmem:[#allocation8 + $0x1] sm:$0xff] %vm1416_vm0, %v1427_v25 }
 0x3f5   : > { %v1433_v0 = vld [vmem:[#allocation8] sm:$0xff]  ;;  %v1434_v26 = vld [vmem:[#allocation8 + $0x8] sm:$0x7] }
 0x3f6   : > { %1963 = vmatprep.mubr.msk.f32.mxu0 %vm1416_vm0, %v1433_v0 }
 0x3f7   : > { %1964 = vmatmul.mubr.msk.f32.vlgmr.msra.gmra.mxu0 %vm1416_vm0, %v1434_v26 }
 0x4b7   : > { %v1965_v28 = vpop.f32.mrf.mxu0 }
 0x4b8   : > { %v1522_v29 = vadd.f32 %v1965_v28, %v1689_v27 }
 0x4b9   : > { %v1516_v30 = vpop.f32.mrf.mxu0 }
 0x4ba   : > { %v1517_v31 = vadd.f32 %v1689_v27, %v1516_v30  ;;  %v1530_v32 = vsel %vm1529_vm2, %v1522_v29, -inf }
 0x4bb   : > { %1531 = vmax.xlane.f32.xlu1 %v1530_v32 }
 0x4bc   : > { %v1526_v33 = vsel %vm1525_vm3, %v1517_v31, -inf }
 0x4bd   : > { %1527 = vmax.xlane.f32.xlu0 %v1526_v33 }
 0x544   : > { %v1532_v34 = vpop.xlane.xlu1 %1531 }
 0x545   : > { %v1534_v35 = vsub.f32 %v1522_v29, %v1532_v34 }
 0x546   : > { %v1528_v36 = vpop.xlane.xlu0 %1527 }
 0x547   : > { %v1533_v37 = vsub.f32 %v1517_v31, %v1528_v36  ;;  %v1537_v38 = vmul.f32 1.442695, %v1534_v35 }
 0x549   : > { %v1535_v39 = vmul.f32 1.442695, %v1533_v37 }
 0x54b   : > { %1996 = vpow2.f32 %v1535_v39 }
 0x54c   : > { %1998 = vpow2.f32 %v1537_v38 }
 0x558   : > { %v1997_v40 = vpop.eup %1996 }
 0x559   : > { %v1539_v41 = vsel %vm1525_vm3, %v1997_v40, 0.0  ;;  %v1999_v42 = vpop.eup %1998 }
 0x55a   : > { %1540 = vadd.xlane.f32.xlu0 %v1539_v41  ;;  %v1542_v43 = vsel %vm1529_vm2, %v1999_v42, 0.0 }
 0x55e   : > { %1543 = vadd.xlane.f32.xlu0 %v1542_v43 }
 0x5e3   : > { %v1541_v44 = vpop.xlane.xlu0 %1540 }
 0x5e4   : > { %2000 = vlog2.f32 %v1541_v44 }
 0x5e7   : > { %v1544_v45 = vpop.xlane.xlu0 %1543 }
 0x5e8   : > { %2002 = vlog2.f32 %v1544_v45 }
 0x5f1   : > { %v2001_v46 = vpop.eup %2000 }
 0x5f2   : > { %v1546_v47 = vmul.f32 0.6931472, %v2001_v46 }
 0x5f4   : > { %v1549_v48 = vadd.f32 %v1546_v47, %v1528_v36 }
 0x5f5   : > { %v2003_v49 = vpop.eup %2002 }
 0x5f6   : > { %v1551_v50 = vsub.f32 %v1517_v31, %v1549_v48  ;;  %v1548_v51 = vmul.f32 0.6931472, %v2003_v49 }
 0x5f8   : > { %1553 = vst.msk [vmem:[%s374_s25] sm:$0xff] %vm1525_vm3, %v1551_v50  ;;  %v1550_v52 = vadd.f32 %v1548_v51, %v1532_v34 }
 0x5fa   : > { %v1552_v53 = vsub.f32 %v1522_v29, %v1550_v52 }
 0x5fc   : > { %1554 = vst.msk [vmem:[%s374_s25 + $0x8] sm:$0x7] %vm1529_vm2, %v1552_v53 }
 0x5fd PF: > { %s21_s13 = sadd.s32 1, %s2040_s13  }
 0x5fe   : > { %p18_p1 = scmp.ge.s32.totalorder %s21_s13, 4  }
 0x600   :  { %20 = sbr.rel (!%p18_p1) target bundleno = 1 (0x1), region = 101 }
 0x605   :  { %1576 = vsyncpa [#allocation10], 1 }
 0x606   :  { %1578 = vsyncpa [#allocation10 + $0x1], 1 }

</bundles_post_ra>
